<compile_context>
chip_gen: v6e
topology: v6e:2x2x1
jax: 0.10.0
libtpu: 0.0.40
codegen_flags: <defaults>
</compile_context>

<pallas_src>
import jax
import jax.numpy as jnp
from jax.experimental import pallas as pl
from jax.experimental.pallas import tpu as pltpu


def _round_up(a: int, m: int) -> int:
    return (a + m - 1) // m * m


def highway_kernel(x_ref, w_ref, b_ref, o_ref):
    """One batch tile of the highway layer.

    x_ref: (TB, Ep)     activation tile (streamed, double-buffered)
    w_ref: (2, Ep, Ep)  stacked [W_proj, W_gate], bf16, resident across grid
    b_ref: (2, 1, Ep)   stacked [b_proj, b_gate], f32, resident across grid
    o_ref: (TB, Ep)     output tile
    """
    x = x_ref[...]
    xf = x.astype(jnp.float32)
    xb = x.astype(jnp.bfloat16)

    # Two MXU matmuls (bf16 operands, f32 accumulation) against the same
    # VMEM-resident x tile -- avoids slicing a fused (TB, 2*Ep) intermediate.
    yp = jnp.dot(xb, w_ref[0], preferred_element_type=jnp.float32) + b_ref[0]
    yg = jnp.dot(xb, w_ref[1], preferred_element_type=jnp.float32) + b_ref[1]

    proj = jnp.maximum(yp, 0.0)                 # relu(x @ Wp + bp)
    gate = 0.5 * (jnp.tanh(0.5 * yg) + 1.0)     # sigmoid via EUP-only tanh

    # g * proj + (1 - g) * x  ==  g * (proj - x) + x
    o_ref[...] = (gate * (proj - xf) + xf).astype(o_ref.dtype)


def prepare_highway_params(w_proj, b_proj, w_gate, b_gate, weight_dtype=jnp.bfloat16):
    """One-time parameter prep -- keep OUTSIDE the per-step jit / call path.

    Weights are expected as (in_features, out_features) == transpose of the
    PyTorch nn.Linear layout, so the kernel computes x @ W + b directly.
    Pads the embed dim to a multiple of 128 (lane-dense), stacks proj/gate into
    one (2, Ep, Ep) tensor, casts weights to bf16; biases stay f32.
    """
    E = w_proj.shape[0]
    Ep = _round_up(E, 128)

    def pad_w(w):
        return jnp.pad(w, ((0, Ep - E), (0, Ep - E)))

    def pad_b(b):
        return jnp.pad(jnp.reshape(b, (1, -1)), ((0, 0), (0, Ep - E)))

    w = jnp.stack([pad_w(w_proj), pad_w(w_gate)]).astype(weight_dtype)  # (2, Ep, Ep)
    b = jnp.stack([pad_b(b_proj), pad_b(b_gate)]).astype(jnp.float32)   # (2, 1, Ep)
    return w, b


def highway(x, w, b, *, tb=None):
    """
    x: (B, E) activations; w: (2, Ep, Ep), b: (2, 1, Ep) from prepare_highway_params.
    Returns (B, E).
    """
    B, E = x.shape
    Ep = w.shape[-1]
    assert w.shape == (2, Ep, Ep) and b.shape == (2, 1, Ep)
    assert Ep >= E and Ep % 128 == 0

    # Lane-dense input: pad the embed dim once. No batch padding -- the ragged
    # last batch tile's out-of-bounds rows are discarded on store.
    xp = x if Ep == E else jnp.pad(x, ((0, 0), (0, Ep - E)))

    # ---- batch tile selection -------------------------------------------
    if tb is None:
        if B <= 8:
            tb = B                                  # full-dim block
        elif B <= 2048:
            # >= 2 grid steps so both v7x TensorCores get work on the
            # "parallel" batch axis, while keeping tiles large.
            tb = _round_up(pl.cdiv(B, 2), 8)
        else:
            tb = 1024                               # keep tiles >= 512-1024

    # ---- VMEM budget ------------------------------------------------------
    try:  # per-core VMEM capacity (128 MiB v5e/v6e, 64 MiB per core v7x)
        vmem_cap = int(getattr(pltpu.get_tpu_info(), "vmem_capacity_bytes",
                               64 * 1024 * 1024))
    except Exception:
        vmem_cap = 64 * 1024 * 1024

    in_itemsize = xp.dtype.itemsize

    def vmem_need(tb_):
        resident = w.size * w.dtype.itemsize + b.size * b.dtype.itemsize
        streamed = 2 * 2 * tb_ * Ep * in_itemsize   # x & out tiles, double-buffered
        interm = 4 * tb_ * Ep * 4                   # f32 yp/yg/proj/gate headroom
        return resident + streamed + interm

    # Re-derive tb (not just clamp the limit) if the tiling would blow the
    # per-core budget -- matters on v7x's 64 MiB VMEM.
    while vmem_need(tb) > int(0.6 * vmem_cap) and tb > 64:
        tb = max(64, _round_up(tb // 2, 8))
    # TODO(synk): for very large E (resident bf16 weights alone near the VMEM
    # budget) add an output-column grid axis marked "arbitrary" instead of
    # keeping the full (2, Ep, Ep) weight resident.

    vmem_limit = int(min(max(2 * vmem_need(tb), 32 * 1024 * 1024),
                         int(0.85 * vmem_cap)))

    grid = (pl.cdiv(B, tb),)
    n_rows = grid[0] * tb

    cost = pl.CostEstimate(
        flops=2 * n_rows * Ep * (2 * Ep),           # two (TB,Ep)@(Ep,Ep) matmuls
        transcendentals=n_rows * Ep,                # tanh (sigmoid)
        bytes_accessed=(xp.nbytes + w.nbytes + b.nbytes
                        + B * Ep * x.dtype.itemsize),
    )

    out = pl.pallas_call(
        highway_kernel,
        out_shape=jax.ShapeDtypeStruct((B, Ep), x.dtype),
        grid=grid,
        in_specs=[
            pl.BlockSpec((tb, Ep), lambda i: (i, 0)),         # streamed x tile
            pl.BlockSpec((2, Ep, Ep), lambda i: (0, 0, 0)),   # resident weights
            pl.BlockSpec((2, 1, Ep), lambda i: (0, 0, 0)),    # resident biases
        ],
        out_specs=pl.BlockSpec((tb, Ep), lambda i: (i, 0)),
        compiler_params=pltpu.CompilerParams(
            dimension_semantics=("parallel",),      # megacore / v7x TC sharding
            vmem_limit_bytes=vmem_limit,
        ),
        cost_estimate=cost,
    )(xp, w, b)

    return out if Ep == E else out[:, :E]


def highway_ref(x, w_proj, b_proj, w_gate, b_gate):
    proj = jax.nn.relu(x @ w_proj + b_proj)
    gate = jax.nn.sigmoid(x @ w_gate + b_gate)
    return gate * proj + (1.0 - gate) * x


if __name__ == "__main__":
    key = jax.random.PRNGKey(0)
    k_x, k_wp, k_bp, k_wg = jax.random.split(key, 4)

    batch_size = 8
    embed_size = 32

    # nn.Linear-style init; weights stored as (in_features, out_features)
    # (transpose of PyTorch layout) so y = x @ W + b.
    bound = 1.0 / jnp.sqrt(embed_size)
    w_proj = jax.random.uniform(k_wp, (embed_size, embed_size), jnp.float32, -bound, bound)
    b_proj = jax.random.uniform(k_bp, (1, embed_size), jnp.float32, -bound, bound)
    w_gate = jax.random.uniform(k_wg, (embed_size, embed_size), jnp.float32, -bound, bound)
    b_gate = jnp.full((1, embed_size), -2.0, dtype=jnp.float32)  # gate.bias.data.fill_(-2.0)

    x = jax.random.normal(k_x, (batch_size, embed_size), jnp.float32)

    # One-time parameter prep (pad to lane-dense Ep, stack proj/gate, cast bf16).
    w, b = prepare_highway_params(w_proj, b_proj, w_gate, b_gate)

    out = jax.block_until_ready(highway(x, w, b))
    ref = highway_ref(x, w_proj, b_proj, w_gate, b_gate)

    assert out.shape == (batch_size, embed_size)
    # bf16 MXU operands (f32 accumulation / f32 combine) -> ~1e-2-level error.
    assert jnp.allclose(out, ref, atol=5e-2, rtol=5e-2), "mismatch vs reference"

    print("KERNEL_OK")
</pallas_src>

<mosaic_0001>
module attributes {stable_mosaic.version = 11 : i64} {
  func.func @highway_kernel(%arg0: i32, %arg1: memref<8x128xf32, #tpu.memory_space<vmem>>, %arg2: memref<2x128x128xbf16, #tpu.memory_space<vmem>>, %arg3: memref<2x1x128xf32, #tpu.memory_space<vmem>>, %arg4: memref<8x128xf32, #tpu.memory_space<vmem>>) attributes {dimension_semantics = [#tpu.dimension_semantics<parallel>], iteration_bounds = array<i64: 1>, scalar_prefetch = 0 : i64, scratch_operands = 0 : i64, tpu.core_type = #tpu.core_type<tc>, window_params = [{transform_indices = @transform_0, window_bounds = array<i64: 8, 128>}, {pipeline_mode = #tpu.pipeline_mode<synchronous>, transform_indices = @transform_1, window_bounds = array<i64: 2, 128, 128>}, {pipeline_mode = #tpu.pipeline_mode<synchronous>, transform_indices = @transform_2, window_bounds = array<i64: 2, 1, 128>}, {transform_indices = @transform_3, window_bounds = array<i64: 8, 128>}]} {
    %c0 = arith.constant 0 : index
    %c0_0 = arith.constant 0 : index
    %0 = vector.load %arg1[%c0, %c0_0] : memref<8x128xf32, #tpu.memory_space<vmem>>, vector<8x128xf32>
    %1 = arith.truncf %0 : vector<8x128xf32> to vector<8x128xbf16>
    %c0_1 = arith.constant 0 : index
    %c0_2 = arith.constant 0 : index
    %c0_3 = arith.constant 0 : index
    %2 = vector.load %arg2[%c0_1, %c0_2, %c0_3] : memref<2x128x128xbf16, #tpu.memory_space<vmem>>, vector<1x128x128xbf16>
    %3 = vector.shape_cast %2 : vector<1x128x128xbf16> to vector<128x128xbf16>
    %cst = arith.constant dense<0.000000e+00> : vector<8x128xf32>
    %4 = tpu.matmul %1, %3, %cst {dimension_numbers = #tpu.dot_dimension_numbers<[1], [0], [0], [1], [0, 0, 1, 1], [], []>} : vector<8x128xbf16>, vector<128x128xbf16>, vector<8x128xf32> -> vector<8x128xf32>
    %c0_4 = arith.constant 0 : index
    %c0_5 = arith.constant 0 : index
    %c0_6 = arith.constant 0 : index
    %5 = vector.load %arg3[%c0_4, %c0_5, %c0_6] : memref<2x1x128xf32, #tpu.memory_space<vmem>>, vector<1x1x128xf32>
    %6 = vector.shape_cast %5 : vector<1x1x128xf32> to vector<1x128xf32>
    %7 = vector.broadcast %6 : vector<1x128xf32> to vector<8x128xf32>
    %8 = arith.addf %4, %7 : vector<8x128xf32>
    %c1 = arith.constant 1 : index
    %c0_7 = arith.constant 0 : index
    %c0_8 = arith.constant 0 : index
    %9 = vector.load %arg2[%c1, %c0_7, %c0_8] : memref<2x128x128xbf16, #tpu.memory_space<vmem>>, vector<1x128x128xbf16>
    %10 = vector.shape_cast %9 : vector<1x128x128xbf16> to vector<128x128xbf16>
    %cst_9 = arith.constant dense<0.000000e+00> : vector<8x128xf32>
    %11 = tpu.matmul %1, %10, %cst_9 {dimension_numbers = #tpu.dot_dimension_numbers<[1], [0], [0], [1], [0, 0, 1, 1], [], []>} : vector<8x128xbf16>, vector<128x128xbf16>, vector<8x128xf32> -> vector<8x128xf32>
    %c1_10 = arith.constant 1 : index
    %c0_11 = arith.constant 0 : index
    %c0_12 = arith.constant 0 : index
    %12 = vector.load %arg3[%c1_10, %c0_11, %c0_12] : memref<2x1x128xf32, #tpu.memory_space<vmem>>, vector<1x1x128xf32>
    %13 = vector.shape_cast %12 : vector<1x1x128xf32> to vector<1x128xf32>
    %14 = vector.broadcast %13 : vector<1x128xf32> to vector<8x128xf32>
    %15 = arith.addf %11, %14 : vector<8x128xf32>
    %cst_13 = arith.constant 0.000000e+00 : f32
    %16 = vector.broadcast %cst_13 : f32 to vector<8x128xf32>
    %17 = arith.maximumf %8, %16 : vector<8x128xf32>
    %cst_14 = arith.constant 5.000000e-01 : f32
    %18 = vector.broadcast %cst_14 : f32 to vector<8x128xf32>
    %19 = arith.mulf %18, %15 : vector<8x128xf32>
    %20 = math.tanh %19 : vector<8x128xf32>
    %cst_15 = arith.constant 1.000000e+00 : f32
    %21 = vector.broadcast %cst_15 : f32 to vector<8x128xf32>
    %22 = arith.addf %20, %21 : vector<8x128xf32>
    %cst_16 = arith.constant 5.000000e-01 : f32
    %23 = vector.broadcast %cst_16 : f32 to vector<8x128xf32>
    %24 = arith.mulf %23, %22 : vector<8x128xf32>
    %25 = arith.subf %17, %0 : vector<8x128xf32>
    %26 = arith.mulf %24, %25 : vector<8x128xf32>
    %27 = arith.addf %26, %0 : vector<8x128xf32>
    %c0_17 = arith.constant 0 : index
    %c0_18 = arith.constant 0 : index
    %28 = vector.load %arg4[%c0_17, %c0_18] : memref<8x128xf32, #tpu.memory_space<vmem>>, vector<8x128xf32>
    tpu.vector_store %arg4[%c0_17, %c0_18], %27 {strides = array<i32>} : memref<8x128xf32, #tpu.memory_space<vmem>>, vector<8x128xf32>,
    return
  }
  func.func @transform_0(%arg0: i32) -> (i32, i32) {
    %c0_i32 = arith.constant 0 : i32
    %c0_i32_0 = arith.constant 0 : i32
    return %arg0, %c0_i32 : i32, i32
  }
  func.func @transform_1(%arg0: i32) -> (i32, i32, i32) {
    %c0_i32 = arith.constant 0 : i32
    %c0_i32_0 = arith.constant 0 : i32
    %c0_i32_1 = arith.constant 0 : i32
    %c0_i32_2 = arith.constant 0 : i32
    return %c0_i32, %c0_i32_0, %c0_i32_1 : i32, i32, i32
  }
  func.func @transform_2(%arg0: i32) -> (i32, i32, i32) {
    %c0_i32 = arith.constant 0 : i32
    %c0_i32_0 = arith.constant 0 : i32
    %c0_i32_1 = arith.constant 0 : i32
    %c0_i32_2 = arith.constant 0 : i32
    return %c0_i32, %c0_i32_0, %c0_i32_1 : i32, i32, i32
  }
  func.func @transform_3(%arg0: i32) -> (i32, i32) {
    %c0_i32 = arith.constant 0 : i32
    %c0_i32_0 = arith.constant 0 : i32
    return %arg0, %c0_i32 : i32, i32
  }
}

</mosaic_0001>

<bundles_post_ra>
// kernel: tpu_custom_call.1
= control target key start
LH: loop header
LB: loop body
LE: loop exit
PB: predicated region body
PF: predicated region fallthrough
CT: control target
= control target key end

     0   :  { %8 = vsyncpa [#allocation3], 0  ;;  %s503_s0 = inlined_call_operand.hbm [shape: f32[8,128], index: 0, kind: input, shape index: {}]   ;;  %s504_s1 = inlined_call_operand.hbm [shape: bf16[2,128,128], index: 1, kind: input, shape index: {}]   ;;  %s505_s2 = inlined_call_operand.vmem [shape: f32[2,1,128], index: 2, kind: input, shape index: {}]   ;;  %s506_s3 = inlined_call_operand.hbm [shape: f32[8,128], index: 3, kind: output, shape index: {}]  }
   0x1   :  { %9 = vsyncpa [#allocation6], 0 }
   0x2   :  { %10 = vsyncpa [#allocation4], 0  ;;  %s461_s12 = smov [#allocation2]   ;;  %s462_s14 = smov [#allocation5]  }
   0x3   :  { %s17_s13 = sshll.u32 %s461_s12, 4  ;;  %s26_s15 = sshll.u32 %s462_s14, 4  ;;  %s18_s13 = int_to_ptr.vmem [resolvable:$true] %s17_s13  ;;  %s27_s15 = int_to_ptr.vmem [resolvable:$true] %s26_s15 }
   0x4   :  { %s403_s16 = scalar_lea.vmem %s18_s13, 128  ;;  %p408_p1 = scmp.lt.s32.totalorder %s18_s13, %s18_s13 }
   0x5   :  { %p404_p0 = scmp.ne.s32.totalorder %s18_s13, %s403_s16  ;;  %p409_p2 = scmp.lt.s32.totalorder %s403_s16, %s403_s16 }
   0x7   :  { %p410_p3 = por %p409_p2, %p408_p1 }
   0x9   :  { %p411_p4 = pnand %p410_p3, %p404_p0 }
   0xb   :  { %414 = shalt.err (!%p411_p4)
}
   0xc   :  { %20 = dma.hbm_to_vmem [thread:$0]  %s503_s0, 128, %s18_s13, [#allocation3]  }
   0xd   :  { %s423_s19 = scalar_lea.vmem %s27_s15, 2048  ;;  %p428_p6 = scmp.lt.s32.totalorder %s27_s15, %s27_s15 }
   0xe   :  { %p424_p5 = scmp.ne.s32.totalorder %s27_s15, %s423_s19  ;;  %p429_p7 = scmp.lt.s32.totalorder %s423_s19, %s423_s19 }
  0x10   :  { %p430_p8 = por %p429_p7, %p428_p6 }
  0x12   :  { %p431_p9 = pnand %p430_p8, %p424_p5 }
  0x14   :  { %434 = shalt.err (!%p431_p9)
}
  0x15   :  { %s463_s20 = smov 64   ;;  %s464_s21 = smov 4  }
  0x16   :  { %32 = dma.hbm_to_vmem [thread:$0]  %s504_s1, 2048, %s27_s15, [#allocation6], %s463_s20, %s463_s20, %s464_s21  }
  0x17   :  { %455 = dma.done.wait [#allocation3], 128  }
  0x18   :  { %456 = vsyncadd [#allocation3], 4294967168 }
  0x19   :  { %457 = dma.done.wait [#allocation6], 2048  }
  0x1a   :  { %458 = vsyncadd [#allocation6], 4294965248  ;;  %v465_v0 = vmov 0.0   ;;  %vm466_vm0 = vmmov 0   ;;  %v377_v1 = vld [vmem:[#allocation5 + $0x78] sm:$0xff]   ;;  %v378_v2 = vld [vmem:[#allocation5 + $0x70] sm:$0xff]  }
  0x1b   :  { %350 = vmatprep.subr.bf16.mxu1 %v465_v0  ;;  %330 = vmatprep.subr.bf16.mxu0 %v465_v0  ;;  %v380_v3 = vld [vmem:[#allocation5 + $0x38] sm:$0xff]   ;;  %v382_v4 = vld [vmem:[#allocation5 + $0x30] sm:$0xff]   ;;  %v379_v5 = vld [vmem:[#allocation5 + $0x68] sm:$0xff]   ;;  %s467_s26 = smov [#allocation7]  }
  0x1c   :  { %366 = vmatprep.mubr.msk.bf16.mxu1 %vm466_vm0, %v465_v0  ;;  %346 = vmatprep.mubr.msk.bf16.mxu0 %vm466_vm0, %v465_v0  ;;  %v384_v6 = vld [vmem:[#allocation5 + $0x28] sm:$0xff]   ;;  %v381_v7 = vld [vmem:[#allocation5 + $0x60] sm:$0xff]   ;;  %v383_v9 = vld [vmem:[#allocation5 + $0x58] sm:$0xff]   ;;  %s283_s27 = sshll.u32 %s467_s26, 4  ;;  %s284_s27 = int_to_ptr.vmem [resolvable:$true] %s283_s27 }
  0x1d   :  { %351 = vmatpush3.bf16.msra.mxu1 %v377_v1  ;;  %331 = vmatpush3.bf16.msra.mxu0 %v380_v3  ;;  %v386_v8 = vld [vmem:[#allocation5 + $0x20] sm:$0xff]   ;;  %v388_v10 = vld [vmem:[#allocation5 + $0x18] sm:$0xff]   ;;  %v385_v11 = vld [vmem:[#allocation5 + $0x50] sm:$0xff]   ;;  %s435_s28 = scalar_lea.vmem %s284_s27, 128  ;;  %p440_p11 = scmp.lt.s32.totalorder %s284_s27, %s284_s27 }
  0x1e   :  { %352 = vmatprep.subr.bf16.mxu1 %v465_v0  ;;  %332 = vmatprep.subr.bf16.mxu0 %v465_v0  ;;  %v390_v12 = vld [vmem:[#allocation5 + $0x10] sm:$0xff]   ;;  %v387_v13 = vld [vmem:[#allocation5 + $0x48] sm:$0xff]   ;;  %v389_v15 = vld [vmem:[#allocation5 + $0x40] sm:$0xff]   ;;  %p436_p10 = scmp.ne.s32.totalorder %s284_s27, %s435_s28  ;;  %p441_p12 = scmp.lt.s32.totalorder %s435_s28, %s435_s28 }
  0x1f   :  { %v391_v14 = vld [vmem:[#allocation5 + $0x8] sm:$0xff]   ;;  %v42_v16 = vld [vmem:[#allocation2] sm:$0xff]  ;;  %v392_v18 = vld [vmem:[#allocation5] sm:$0xff]  }
  0x20   :  { %v43_v17 = vpack.c.bf16 %v42_v16, %v42_v16  ;;  %v303_v19 = vld [vmem:[%s505_s2 + $0x1] ss:$0 sm:$0xff]  ;;  %v293_v29 = vld [vmem:[%s505_s2] ss:$0 sm:$0xff]  ;;  %p442_p13 = por %p441_p12, %p440_p11 }
  0x21   :  { %353 = vmatpush3.bf16.msra.mxu1 %v378_v2  ;;  %333 = vmatpush3.bf16.msra.mxu0 %v382_v4 }
  0x22   :  { %354 = vmatprep.subr.bf16.mxu1 %v465_v0  ;;  %334 = vmatprep.subr.bf16.mxu0 %v465_v0  ;;  %p443_p0 = pnand %p442_p13, %p436_p10 }
  0x25   :  { %355 = vmatpush3.bf16.msra.mxu1 %v379_v5  ;;  %335 = vmatpush3.bf16.msra.mxu0 %v384_v6 }
  0x26   :  { %356 = vmatprep.subr.bf16.mxu1 %v465_v0  ;;  %336 = vmatprep.subr.bf16.mxu0 %v465_v0 }
  0x29   :  { %357 = vmatpush3.bf16.msra.mxu1 %v381_v7  ;;  %337 = vmatpush3.bf16.msra.mxu0 %v386_v8 }
  0x2a   :  { %358 = vmatprep.subr.bf16.mxu1 %v465_v0  ;;  %338 = vmatprep.subr.bf16.mxu0 %v465_v0 }
  0x2d   :  { %359 = vmatpush3.bf16.msra.mxu1 %v383_v9  ;;  %339 = vmatpush3.bf16.msra.mxu0 %v388_v10 }
  0x2e   :  { %360 = vmatprep.subr.bf16.mxu1 %v465_v0  ;;  %340 = vmatprep.subr.bf16.mxu0 %v465_v0 }
  0x31   :  { %361 = vmatpush3.bf16.msra.mxu1 %v385_v11  ;;  %341 = vmatpush3.bf16.msra.mxu0 %v390_v12 }
  0x32   :  { %362 = vmatprep.subr.bf16.mxu1 %v465_v0  ;;  %342 = vmatprep.subr.bf16.mxu0 %v465_v0 }
  0x35   :  { %363 = vmatpush3.bf16.msra.mxu1 %v387_v13  ;;  %343 = vmatpush3.bf16.msra.mxu0 %v391_v14 }
  0x36   :  { %364 = vmatprep.subr.bf16.mxu1 %v465_v0  ;;  %344 = vmatprep.subr.bf16.mxu0 %v465_v0 }
  0x39   :  { %365 = vmatpush3.bf16.msra.mxu1 %v389_v15  ;;  %345 = vmatpush3.bf16.msra.mxu0 %v392_v18 }
  0x3c   :  { %367 = vmatmul.mubr.bf16.vlgmr.msra.gmra.mxu1 %v43_v17  ;;  %347 = vmatmul.mubr.bf16.vlgmr.msra.gmra.mxu0 %v43_v17 }
  0xfc   :  { %v262_v20 = vpop.f32.mrf.mxu1  ;;  %v149_v24 = vpop.f32.mrf.mxu0 }
  0xfd   :  { %v263_v21 = vadd.f32 %v303_v19, %v262_v20  ;;  %v150_v31 = vadd.f32 %v293_v29, %v149_v24 }
  0xfe   :  { %v368_v22 = vpop.f32.mrf.mxu1  ;;  %v348_v26 = vpop.f32.mrf.mxu0 }
  0xff   :  { %v269_v23 = vmul.f32 0.5, %v263_v21  ;;  %v268_v32 = vmax.f32 %v150_v31, 0.0 }
 0x100   :  { %v265_v25 = vpop.f32.mrf.mxu1  ;;  %v152_v28 = vpop.f32.mrf.mxu0 }
 0x101   :  { %393 = vtanh.f32 %v269_v23  ;;  %v273_v35 = vsub.f32 %v268_v32, %v42_v16 }
 0x102   :  { %v369_v27 = vpop.f32.mrf.mxu1  ;;  %v349_v30 = vpop.f32.mrf.mxu0 }
 0x10e   :  { %v394_v33 = vpop.eup %393 }
 0x10f   :  { %v271_v34 = vadd.f32 1.0, %v394_v33 }
 0x111   :  { %v272_v36 = vmul.f32 0.5, %v271_v34 }
 0x113   :  { %v274_v37 = vmul.f32 %v273_v35, %v272_v36 }
 0x115   :  { %v275_v38 = vadd.f32 %v274_v37, %v42_v16 }
 0x117   :  { %276 = vst [vmem:[#allocation7] sm:$0xff] %v275_v38 }
 0x118   :  { %446 = shalt.err (!%p443_p0)
}
 0x119   :  { %286 = dma.vmem_to_hbm [thread:$0]  %s284_s27, 128, %s506_s3, [#allocation4]  }
 0x11a   :  { %459 = dma.done.wait [#allocation4], 128  }
 0x11b   :  { %460 = vsyncadd [#allocation4], 4294967168 }
 0x11c   :  { %290 = vsyncpa [#allocation3], 1 }
 0x11d   :  { %291 = vsyncpa [#allocation6], 1 }
 0x11e   :  { %292 = vsyncpa [#allocation4], 1 }

</bundles_post_ra>
